<compile_context>
chip_gen: v5e
topology: v5e:2x2
jax: 0.10.0
libtpu: 0.0.40
codegen_flags: <defaults>
</compile_context>

<pallas_src>
import jax
import jax.numpy as jnp
from jax.experimental import pallas as pl
from jax.experimental.pallas import tpu as pltpu


# Packed layout constants: K_total = 16+16+32+64 = 128, N_real = 16+32+32+64 = 144
K_TOTAL = 128
N_REAL = 144
N_PAD = 256  # lane-dense (multiple of 128); maps cleanly onto v5e 128x128 and
             # v6e/v7x 256x256 MXU tiles.

# Column ranges of each layer's output inside the packed (1, N_PAD) slab.
_SL1 = (0, 16)
_SL2 = (16, 48)
_SL3 = (48, 80)
_SL4 = (80, 144)


def _fused_linear_kernel(x_ref, w_ref, b_ref, o_ref):
    """o = x_cat @ W_packed + b_packed   — single MXU pass, lane-dense store."""
    acc = jnp.dot(x_ref[...], w_ref[...], preferred_element_type=jnp.float32)
    o_ref[...] = (acc + b_ref[...]).astype(o_ref.dtype)


def fused_linears(x_cat, w_packed, b_packed):
    """x_cat: (M, 128) f32, w_packed: (128, 256) f32, b_packed: (1, 256) f32."""
    m = x_cat.shape[0]
    return pl.pallas_call(
        _fused_linear_kernel,
        out_shape=jax.ShapeDtypeStruct((m, N_PAD), jnp.float32),
        in_specs=[
            pl.BlockSpec(memory_space=pltpu.MemorySpace.VMEM),
            pl.BlockSpec(memory_space=pltpu.MemorySpace.VMEM),
            pl.BlockSpec(memory_space=pltpu.MemorySpace.VMEM),
        ],
        out_specs=pl.BlockSpec(memory_space=pltpu.MemorySpace.VMEM),
    )(x_cat, w_packed, b_packed)


def init_params(key):
    """Deterministic PyTorch-Linear-style init (uniform +/- 1/sqrt(fan_in))."""
    def linear_params(k, in_f, out_f):
        kw, kb = jax.random.split(k)
        bound = 1.0 / (in_f ** 0.5)
        w = jax.random.uniform(kw, (out_f, in_f), jnp.float32, -bound, bound)
        b = jax.random.uniform(kb, (out_f,), jnp.float32, -bound, bound)
        return w, b

    k1, k2, k3, k4 = jax.random.split(key, 4)
    return {
        "l1": linear_params(k1, 16, 16),
        "l2": linear_params(k2, 16, 32),
        "l3": linear_params(k3, 32, 32),
        "l4": linear_params(k4, 64, 64),
    }


def pack_params(params):
    """One-time packing: block-diagonal (128, 256) W^T + (1, 256) bias.

    Done once outside the forward, so no per-call transpose / reshape /
    extra HBM round-trips.  Padded columns are zero, so results are exact.
    """
    (w1, b1) = params["l1"]   # (16, 16), (16,)
    (w2, b2) = params["l2"]   # (32, 16), (32,)
    (w3, b3) = params["l3"]   # (32, 32), (32,)
    (w4, b4) = params["l4"]   # (64, 64), (64,)

    w = jnp.zeros((K_TOTAL, N_PAD), jnp.float32)
    w = w.at[0:16,   _SL1[0]:_SL1[1]].set(w1.T)
    w = w.at[16:32,  _SL2[0]:_SL2[1]].set(w2.T)
    w = w.at[32:64,  _SL3[0]:_SL3[1]].set(w3.T)
    w = w.at[64:128, _SL4[0]:_SL4[1]].set(w4.T)

    b = jnp.zeros((1, N_PAD), jnp.float32)
    b = b.at[0, _SL1[0]:_SL1[1]].set(b1)
    b = b.at[0, _SL2[0]:_SL2[1]].set(b2)
    b = b.at[0, _SL3[0]:_SL3[1]].set(b3)
    b = b.at[0, _SL4[0]:_SL4[1]].set(b4)
    return {"w": w, "b": b}


@jax.jit
def model_forward(packed, x1, x2, x3, x4):
    # --- hot path: ONE fused addmm in Pallas ---
    x_cat = jnp.concatenate([x1, x2, x3, x4], axis=1)       # (1, 128) — glue
    out = fused_linears(x_cat, packed["w"], packed["b"])     # (1, 256)

    y1 = out[:, _SL1[0]:_SL1[1]]                             # (1, 16)
    y2 = out[:, _SL2[0]:_SL2[1]]                             # (1, 32)
    y3 = out[:, _SL3[0]:_SL3[1]]                             # (1, 32)
    y4 = out[:, _SL4[0]:_SL4[1]]                             # (1, 64)

    # --- glue: stack / repeat / single-tensor cats (kept in XLA) ---
    # TODO(synk): torch.cat([y3], dim=2) uses an out-of-range dim for a 2-D
    # tensor and raises in PyTorch; single-tensor cat is treated as identity.
    x3c = y3                                                 # (1, 32)
    x3s = x3c[None, ...]                                     # stack -> (1, 1, 32)
    x3r = jnp.tile(x3s, (2, 3, 1))                           # repeat(2,3,1) -> (2, 3, 32)

    # TODO(synk): torch.cat([y1, y2, x3r], dim=0) mixes incompatible
    # ranks/shapes and raises in PyTorch; returning the components instead.
    out1 = (y1, y2, x3r)

    x4s = y4[None, ...]                                      # stack -> (1, 1, 64)
    x4r = jnp.tile(x4s, (1, 3, 1))                           # repeat(1,3,1) -> (1, 3, 64)
    x5 = jnp.concatenate([x4r], axis=0)                      # cat([x4], dim=0) -> (1, 3, 64)
    x6 = jnp.concatenate([x5], axis=0)                       # cat([x5], dim=0) -> (1, 3, 64)

    return out1, x6


if __name__ == "__main__":
    key = jax.random.PRNGKey(0)
    kp, k1, k2, k3, k4 = jax.random.split(key, 5)

    params = init_params(kp)
    packed = pack_params(params)   # one-time packing, outside the jitted forward

    x1 = jax.random.normal(k1, (1, 16), jnp.float32)
    x2 = jax.random.normal(k2, (1, 16), jnp.float32)
    x3 = jax.random.normal(k3, (1, 32), jnp.float32)
    x4 = jax.random.normal(k4, (1, 64), jnp.float32)

    (y1, y2, x3r), x6 = model_forward(packed, x1, x2, x3, x4)
    jax.block_until_ready((y1, y2, x3r, x6))

    # sanity checks against a pure-JAX reference of every Pallas-computed output
    ref1 = x1 @ params["l1"][0].T + params["l1"][1]
    ref2 = x2 @ params["l2"][0].T + params["l2"][1]
    ref3 = x3 @ params["l3"][0].T + params["l3"][1]
    ref4 = x4 @ params["l4"][0].T + params["l4"][1]
    assert jnp.allclose(y1, ref1, atol=1e-5)
    assert jnp.allclose(y2, ref2, atol=1e-5)
    assert jnp.allclose(x3r[0, 0], ref3[0], atol=1e-5)
    assert jnp.allclose(x3r[1, 2], ref3[0], atol=1e-5)
    assert jnp.allclose(x6[0, 0], ref4[0], atol=1e-5)
    assert jnp.allclose(x6[0, 2], ref4[0], atol=1e-5)
    assert y1.shape == (1, 16) and y2.shape == (1, 32)
    assert x3r.shape == (2, 3, 32) and x6.shape == (1, 3, 64)

    print("KERNEL_OK")
</pallas_src>

<mosaic_0001>
module attributes {stable_mosaic.version = 11 : i64} {
  func.func @_fused_linear_kernel(%arg0: memref<1x128xf32, #tpu.memory_space<vmem>>, %arg1: memref<128x256xf32, #tpu.memory_space<vmem>>, %arg2: memref<1x256xf32, #tpu.memory_space<vmem>>, %arg3: memref<1x256xf32, #tpu.memory_space<vmem>>) attributes {dimension_semantics = [], scalar_prefetch = 0 : i64, scratch_operands = 0 : i64, tpu.core_type = #tpu.core_type<tc>} {
    %c0 = arith.constant 0 : index
    %c0_0 = arith.constant 0 : index
    %0 = vector.load %arg0[%c0, %c0_0] : memref<1x128xf32, #tpu.memory_space<vmem>>, vector<1x128xf32>
    %c0_1 = arith.constant 0 : index
    %c0_2 = arith.constant 0 : index
    %1 = vector.load %arg1[%c0_1, %c0_2] : memref<128x256xf32, #tpu.memory_space<vmem>>, vector<128x256xf32>
    %cst = arith.constant dense<0.000000e+00> : vector<1x256xf32>
    %2 = tpu.matmul %0, %1, %cst {dimension_numbers = #tpu.dot_dimension_numbers<[1], [0], [0], [1], [0, 0, 1, 1], [], []>} : vector<1x128xf32>, vector<128x256xf32>, vector<1x256xf32> -> vector<1x256xf32>
    %c0_3 = arith.constant 0 : index
    %c0_4 = arith.constant 0 : index
    %3 = vector.load %arg2[%c0_3, %c0_4] : memref<1x256xf32, #tpu.memory_space<vmem>>, vector<1x256xf32>
    %4 = arith.addf %2, %3 : vector<1x256xf32>
    %c0_5 = arith.constant 0 : index
    %c0_6 = arith.constant 0 : index
    %5 = vector.load %arg3[%c0_5, %c0_6] : memref<1x256xf32, #tpu.memory_space<vmem>>, vector<1x256xf32>
    tpu.vector_store %arg3[%c0_5, %c0_6], %4 {strides = array<i32>} : memref<1x256xf32, #tpu.memory_space<vmem>>, vector<1x256xf32>,
    return
  }
}

</mosaic_0001>

<bundles_post_ra>
// kernel: model_forward.1
= control target key start
LH: loop header
LB: loop body
LE: loop exit
PB: predicated region body
PF: predicated region fallthrough
CT: control target
= control target key end

     0   :  { %8 = vsyncpa [#allocation3], 0  ;;  %s154_s15 = smov [#allocation2]   ;;  %s155_s17 = smov 256   ;;  %s189_s0 = inlined_call_operand.vmem [shape: f32[1,128], index: 0, kind: input, shape index: {}]   ;;  %s190_s1 = inlined_call_operand.hbm [shape: f32[128,256], index: 1, kind: input, shape index: {}]   ;;  %s191_s2 = inlined_call_operand.vmem [shape: f32[1,256], index: 2, kind: input, shape index: {}]   ;;  %s192_s3 = inlined_call_operand.vmem [shape: f32[1,256], index: 3, kind: output, shape index: {}]  }
   0x1   :  { %s15_s14 = sshll.u32 %s190_s1, 4  ;;  %s17_s16 = sshll.u32 %s154_s15, 4  ;;  %s16_s14 = int_to_ptr.hbm [resolvable:$true] %s15_s14  ;;  %s18_s16 = int_to_ptr.vmem [resolvable:$true] %s17_s16 }
   0x2   :  { %s156_s18 = smov 16  }
   0x3   :  { %23 = dma.hbm_to_vmem [thread:$0]  %s16_s14, 4096, %s18_s16, [#allocation3], %s155_s17, %s155_s17, %s156_s18  }
   0x4   :  { %152 = dma.done.wait [#allocation3], 4096  }
   0x5   :  { %153 = vsyncadd [#allocation3], 4294963200  ;;  %v62_v0 = vld [vmem:[#allocation2 + $0xf8] sm:$0xff]  ;;  %v61_v1 = vld [vmem:[#allocation2 + $0xf0] sm:$0xff]  ;;  %v115_v36 = vlaneseq  ;;  %vm112_vm0 = vcmask 1040384  }
   0x6   :  { %v60_v2 = vld [vmem:[#allocation2 + $0xe8] sm:$0xff]  ;;  %89 = vmatpush.msra.mxu1 %v62_v0  ;;  %69 = vmatpush.msra.mxu0 %v61_v1  ;;  %v59_v3 = vld [vmem:[#allocation2 + $0xe0] sm:$0xff]  ;;  %v58_v4 = vld [vmem:[#allocation2 + $0xd8] sm:$0xff] }
   0x7   :  { %v57_v5 = vld [vmem:[#allocation2 + $0xd0] sm:$0xff]  ;;  %v56_v6 = vld [vmem:[#allocation2 + $0xc8] sm:$0xff]  ;;  %v55_v7 = vld [vmem:[#allocation2 + $0xc0] sm:$0xff]  ;;  %vm117_vm1 = vcmp.lt.s32.totalorder %v115_v36, 256 }
   0x8   :  { %90 = vmatpush.msra.mxu1 %v60_v2  ;;  %70 = vmatpush.msra.mxu0 %v59_v3  ;;  %v54_v8 = vld [vmem:[#allocation2 + $0xb8] sm:$0xff]  ;;  %v53_v9 = vld [vmem:[#allocation2 + $0xb0] sm:$0xff]  ;;  %v52_v10 = vld [vmem:[#allocation2 + $0xa8] sm:$0xff] }
   0x9   :  { %v51_v11 = vld [vmem:[#allocation2 + $0xa0] sm:$0xff]  ;;  %v50_v12 = vld [vmem:[#allocation2 + $0x98] sm:$0xff]  ;;  %v49_v13 = vld [vmem:[#allocation2 + $0x90] sm:$0xff] }
   0xa   :  { %91 = vmatpush.msra.mxu1 %v58_v4  ;;  %71 = vmatpush.msra.mxu0 %v57_v5  ;;  %v48_v14 = vld [vmem:[#allocation2 + $0x88] sm:$0xff]  ;;  %v47_v15 = vld [vmem:[#allocation2 + $0x80] sm:$0xff]  ;;  %v46_v16 = vld [vmem:[#allocation2 + $0x78] sm:$0xff] }
   0xb   :  { %v45_v17 = vld [vmem:[#allocation2 + $0x70] sm:$0xff]  ;;  %v44_v18 = vld [vmem:[#allocation2 + $0x68] sm:$0xff]  ;;  %v43_v19 = vld [vmem:[#allocation2 + $0x60] sm:$0xff] }
   0xc   :  { %92 = vmatpush.msra.mxu1 %v56_v6  ;;  %72 = vmatpush.msra.mxu0 %v55_v7  ;;  %v42_v20 = vld [vmem:[#allocation2 + $0x58] sm:$0xff]  ;;  %v41_v21 = vld [vmem:[#allocation2 + $0x50] sm:$0xff]  ;;  %v40_v22 = vld [vmem:[#allocation2 + $0x48] sm:$0xff] }
   0xd   :  { %v39_v23 = vld [vmem:[#allocation2 + $0x40] sm:$0xff]  ;;  %v38_v24 = vld [vmem:[#allocation2 + $0x38] sm:$0xff]  ;;  %v37_v25 = vld [vmem:[#allocation2 + $0x30] sm:$0xff] }
   0xe   :  { %93 = vmatpush.msra.mxu1 %v54_v8  ;;  %73 = vmatpush.msra.mxu0 %v53_v9  ;;  %v36_v26 = vld [vmem:[#allocation2 + $0x28] sm:$0xff]  ;;  %v35_v27 = vld [vmem:[#allocation2 + $0x20] sm:$0xff]  ;;  %v34_v28 = vld [vmem:[#allocation2 + $0x18] sm:$0xff] }
   0xf   :  { %v33_v29 = vld [vmem:[#allocation2 + $0x10] sm:$0xff]  ;;  %v32_v30 = vld [vmem:[#allocation2 + $0x8] sm:$0xff]  ;;  %v31_v31 = vld [vmem:[#allocation2] sm:$0xff] }
  0x10   :  { %94 = vmatpush.msra.mxu1 %v52_v10  ;;  %74 = vmatpush.msra.mxu0 %v51_v11  ;;  %v30_v32 = vld [vmem:[%s189_s0] sm:$0x1] }
  0x11   :  { %v63_v33 = vld [vmem:[%s191_s2] sm:$0x3] }
  0x12   :  { %95 = vmatpush.msra.mxu1 %v50_v12  ;;  %75 = vmatpush.msra.mxu0 %v49_v13  ;;  %v66_v34 = vperm.slane %v63_v33, 1  ;;  %v65_v35 = vperm.slane %v63_v33, 0 }
  0x14   :  { %96 = vmatpush.msra.mxu1 %v48_v14  ;;  %76 = vmatpush.msra.mxu0 %v47_v15 }
  0x16   :  { %97 = vmatpush.msra.mxu1 %v46_v16  ;;  %77 = vmatpush.msra.mxu0 %v45_v17 }
  0x18   :  { %98 = vmatpush.msra.mxu1 %v44_v18  ;;  %78 = vmatpush.msra.mxu0 %v43_v19 }
  0x1a   :  { %99 = vmatpush.msra.mxu1 %v42_v20  ;;  %79 = vmatpush.msra.mxu0 %v41_v21 }
  0x1c   :  { %100 = vmatpush.msra.mxu1 %v40_v22  ;;  %80 = vmatpush.msra.mxu0 %v39_v23 }
  0x1e   :  { %101 = vmatpush.msra.mxu1 %v38_v24  ;;  %81 = vmatpush.msra.mxu0 %v37_v25 }
  0x20   :  { %102 = vmatpush.msra.mxu1 %v36_v26  ;;  %82 = vmatpush.msra.mxu0 %v35_v27 }
  0x22   :  { %103 = vmatpush.msra.mxu1 %v34_v28  ;;  %83 = vmatpush.msra.mxu0 %v33_v29 }
  0x24   :  { %104 = vmatpush.msra.mxu1 %v32_v30  ;;  %84 = vmatpush.msra.mxu0 %v31_v31 }
  0x25   :  { %105 = vmatmul.f32.vlgmr.msra.gmra.mxu1 %v30_v32  ;;  %85 = vmatmul.f32.vlgmr.msra.gmra.mxu0 %v30_v32 }
  0xa2   :  { %v106_v37 = vpop.f32.mrf.mxu1  ;;  %v86_v38 = vpop.f32.mrf.mxu0 }
  0xa3   :  { %v107_v39 = vadd.f32 %v106_v37, %v66_v34  ;;  %v87_v40 = vadd.f32 %v86_v38, %v65_v35 }
  0xa5   :  { %v111_v41 = vrot.slane %v107_v39, 7 }
  0xa7   :  { %v113_v42 = vsel %vm112_vm0, %v87_v40, %v111_v41 }
  0xa8   :  { %119 = vst.msk [vmem:[%s192_s3] sm:$0x3] %vm117_vm1, %v113_v42 }
  0xa9   :  { %124 = vsyncpa [#allocation3], 1 }

</bundles_post_ra>
